<compile_context>
chip_gen: v6e
topology: v6e:2x2x1
jax: 0.10.0
libtpu: 0.0.40
codegen_flags: <defaults>
</compile_context>

<pallas_src>
import functools

import jax
import jax.numpy as jnp
from jax import lax
from jax.experimental import pallas as pl
from jax.experimental.pallas import tpu as pltpu


_LANES = 128
_SUBLANES = 8
_SSE_TILE_ROWS = 8192                  # 8192*128*4B = 4 MiB per input block
_GRAM_TARGET_BYTES = 4 * 1024 * 1024   # ~4 MiB per Gram input block
_GRAM_MIN_K_TILE = 512


def _round_up(x, m):
    return ((x + m - 1) // m) * m


def _vmem_limit_bytes():
    """Generation-aware scoped-VMEM limit (leave headroom for Mosaic scratch)."""
    try:
        cap = int(pltpu.get_tpu_info().vmem_capacity_bytes)
    except Exception:
        cap = 64 * 1024 * 1024          # conservative (v7x physical VMEM)
    limit = min(cap - 16 * 1024 * 1024, 100 * 1024 * 1024)
    return int(max(limit, 32 * 1024 * 1024))


# ---------------------------------------------------------------------------
# Kernel 1: lane-dense partial sums of squared differences (behind F.mse_loss)
# ---------------------------------------------------------------------------
def _sse_partial_kernel(x_ref, y_ref, o_ref, *, tm, total_rows, need_mask):
    xv = x_ref[...].astype(jnp.float32)
    yv = y_ref[...].astype(jnp.float32)
    d = xv - yv
    if need_mask:
        # Last block extends past `total_rows`: out-of-range rows hold garbage
        # (no host padding any more) -> zero them before squaring.
        row = pl.program_id(0) * tm + lax.broadcasted_iota(
            jnp.int32, (tm, _LANES), 0)
        d = jnp.where(row < total_rows, d, 0.0)
    sq = d * d
    # Fold rows into an (8, 128) vreg-shaped partial: pure VPU adds, no XLU.
    o_ref[...] = jnp.sum(sq.reshape(tm // _SUBLANES, _SUBLANES, _LANES), axis=0)


def _sum_squared_diff(x, y):
    """sum((x - y)**2) over all elements; heavy reduction done inside Pallas."""
    xf = x.reshape(-1)
    yf = y.reshape(-1)
    n = xf.shape[0]

    rows = n // _LANES
    n_main = rows * _LANES

    tail = jnp.float32(0.0)
    if n_main != n:
        # Ragged (< 128 element) tail: tiny JAX sum instead of padding the
        # whole tensor on the host.
        xt = xf[n_main:].astype(jnp.float32)
        yt = yf[n_main:].astype(jnp.float32)
        tail = jnp.sum((xt - yt) ** 2)
    if rows == 0:
        return tail

    x2 = xf[:n_main].reshape(rows, _LANES)
    y2 = yf[:n_main].reshape(rows, _LANES)

    tm = min(_SSE_TILE_ROWS, _round_up(rows, _SUBLANES))
    g = pl.cdiv(rows, tm)
    need_mask = (rows % tm) != 0

    kern = functools.partial(
        _sse_partial_kernel, tm=tm, total_rows=rows, need_mask=need_mask)

    partials = pl.pallas_call(
        kern,
        out_shape=jax.ShapeDtypeStruct((g * _SUBLANES, _LANES), jnp.float32),
        grid_spec=pltpu.PrefetchScalarGridSpec(
            num_scalar_prefetch=0,
            grid=(g,),
            in_specs=[
                pl.BlockSpec((tm, _LANES), lambda i: (i, 0)),
                pl.BlockSpec((tm, _LANES), lambda i: (i, 0)),
            ],
            out_specs=pl.BlockSpec((_SUBLANES, _LANES), lambda i: (i, 0)),
        ),
        compiler_params=pltpu.CompilerParams(
            dimension_semantics=("parallel",),
            vmem_limit_bytes=_vmem_limit_bytes(),
        ),
    )(x2, y2)
    return jnp.sum(partials) + tail                     # tiny final reduce in JAX


# ---------------------------------------------------------------------------
# Kernel 2: per-batch squared-Gram-difference Frobenius norm, K (=H*W) tiled
# over the grid.  Accumulates M = sum_k (fs-ft)(fs+ft)^T, whose symmetric part
# equals gram_s_raw - gram_t_raw; emits the per-batch scalar ||D||_F^2.
# ---------------------------------------------------------------------------
_DN_LAST = (((1,), (1,)), ((), ()))   # contract last axis of both (QK^T style)


def _gram_sse_kernel(s_ref, t_ref, o_ref, macc_ref, *, tk, k_total, need_mask):
    k = pl.program_id(1)

    @pl.when(k == 0)
    def _():
        macc_ref[...] = jnp.zeros_like(macc_ref)

    fs = s_ref[0].astype(jnp.float32)                 # (C, tk)
    ft = t_ref[0].astype(jnp.float32)
    diff = fs - ft
    ssum = fs + ft
    if need_mask:
        # Last K tile extends past the real H*W extent: zero BOTH operands in
        # the out-of-range lanes (garbage could be NaN/Inf otherwise).
        col = k * tk + lax.broadcasted_iota(jnp.int32, fs.shape, 1)
        valid = col < k_total
        diff = jnp.where(valid, diff, 0.0)
        ssum = jnp.where(valid, ssum, 0.0)

    macc_ref[...] += lax.dot_general(
        diff, ssum, dimension_numbers=_DN_LAST,
        preferred_element_type=jnp.float32,
        precision=lax.Precision.HIGHEST)

    @pl.when(k == pl.num_programs(1) - 1)
    def _():
        m = macc_ref[...]
        d = 0.5 * (m + m.T)                           # = gram_s_raw - gram_t_raw
        total = jnp.sum(d * d)                        # per-batch scalar
        r = lax.broadcasted_iota(jnp.int32, (_SUBLANES, _LANES), 0)
        c = lax.broadcasted_iota(jnp.int32, (_SUBLANES, _LANES), 1)
        # Lane-dense (8,128) output block, scalar in element [0,0]: one
        # unmasked vreg store, no (C,C) writeback/re-read.
        o_ref[0] = jnp.where((r == 0) & (c == 0), total, 0.0)


def _style_gram_sse(style, target):
    """sum over batch of sum((gram_raw(style) - gram_raw(target))**2)."""
    B, C, H, W = style.shape
    K = H * W
    s = style.reshape(B, C, K)
    t = target.reshape(B, C, K)

    if K < _LANES:
        tk = K                          # full minor dim: single step, no mask
    else:
        # Adaptive K tile: ~4 MiB per input block, 128-aligned.
        tk = (_GRAM_TARGET_BYTES // (4 * C)) // _LANES * _LANES
        tk = max(_GRAM_MIN_K_TILE, tk)
        tk = min(tk, _round_up(K, _LANES))
    nk = pl.cdiv(K, tk)
    need_mask = (K % tk) != 0

    kern = functools.partial(
        _gram_sse_kernel, tk=tk, k_total=K, need_mask=need_mask)

    partials = pl.pallas_call(
        kern,
        out_shape=jax.ShapeDtypeStruct((B, _SUBLANES, _LANES), jnp.float32),
        grid_spec=pltpu.PrefetchScalarGridSpec(
            num_scalar_prefetch=0,
            grid=(B, nk),
            in_specs=[
                pl.BlockSpec((1, C, tk), lambda b, k: (b, 0, k)),
                pl.BlockSpec((1, C, tk), lambda b, k: (b, 0, k)),
            ],
            out_specs=pl.BlockSpec((1, _SUBLANES, _LANES),
                                   lambda b, k: (b, 0, 0)),
            scratch_shapes=[pltpu.VMEM((C, C), jnp.float32)],
        ),
        compiler_params=pltpu.CompilerParams(
            dimension_semantics=("parallel", "arbitrary"),
            vmem_limit_bytes=_vmem_limit_bytes(),
        ),
    )(s, t)
    return jnp.sum(partials)                            # tiny final reduce in JAX


# ---------------------------------------------------------------------------
# StyleCost module (JAX / Pallas version)
# ---------------------------------------------------------------------------
_STYLE_LAYERS = ["conv1_1", "conv2_1", "conv3_1", "conv4_1", "conv5_1"]


class StyleCost:
    def __init__(self, a, b):
        self.alpha = a
        self.beta = b

    def content_contribution(self, content_features, target):
        sse = _sum_squared_diff(content_features, target)
        return sse / float(content_features.size)       # F.mse_loss (mean)

    def style_contribution(self, style_features, target):
        b, c, h, w = style_features.shape
        raw = _style_gram_sse(style_features, target)
        inv = 1.0 / float(c * h * w)                     # gram scale, factored out
        return raw * (inv * inv) / float(b * c * c)      # mean over (b, c, c)

    def __call__(self, content_features, style_features, target):
        content_loss = self.content_contribution(
            content_features["conv4_1"], target["conv4_1"]
        )
        style_loss = 0.0
        for layer in _STYLE_LAYERS:
            style_loss += (
                self.style_contribution(style_features[layer], target[layer]) / 5
            )
        return self.alpha * content_loss + self.beta * style_loss


# ---------------------------------------------------------------------------
# Pure-JAX reference (for correctness check)
# ---------------------------------------------------------------------------
def _reference_loss(content_features, style_features, target, alpha, beta):
    def gram(x):
        b, c, h, w = x.shape
        f = x.reshape(b, c, h * w)
        g = jnp.einsum("bij,bkj->bik", f, f, precision=lax.Precision.HIGHEST)
        return g / (c * h * w)

    content = jnp.mean((content_features["conv4_1"] - target["conv4_1"]) ** 2)
    style = 0.0
    for layer in _STYLE_LAYERS:
        gs = gram(style_features[layer])
        gt = gram(target[layer])
        style += jnp.mean((gs - gt) ** 2) / 5
    return alpha * content + beta * style


if __name__ == "__main__":
    key = jax.random.PRNGKey(0)

    # VGG-like feature pyramid at small shapes (NCHW).
    layer_shapes = {
        "conv1_1": (2, 8, 16, 16),
        "conv2_1": (2, 16, 8, 8),
        "conv3_1": (2, 32, 8, 8),
        "conv4_1": (2, 32, 4, 4),
        "conv5_1": (2, 64, 4, 4),
    }

    style_features = {}
    target_features = {}
    for name, shp in layer_shapes.items():
        key, k1, k2 = jax.random.split(key, 3)
        style_features[name] = jax.random.normal(k1, shp, dtype=jnp.float32)
        target_features[name] = jax.random.normal(k2, shp, dtype=jnp.float32)

    key, kc = jax.random.split(key)
    content_features = {
        "conv4_1": jax.random.normal(kc, layer_shapes["conv4_1"], dtype=jnp.float32)
    }

    alpha, beta = 1.0, 1000.0  # deterministic "parameters" of the module
    cost = StyleCost(alpha, beta)

    loss = jax.block_until_ready(
        cost(content_features, style_features, target_features)
    )

    ref = jax.block_until_ready(
        _reference_loss(content_features, style_features, target_features, alpha, beta)
    )
    assert jnp.allclose(loss, ref, rtol=1e-4, atol=1e-5), (loss, ref)

    print("KERNEL_OK")
</pallas_src>

<mosaic_0001>
module attributes {stable_mosaic.version = 11 : i64} {
  func.func @_sse_partial_kernel(%arg0: i32, %arg1: memref<8x128xf32, #tpu.memory_space<vmem>>, %arg2: memref<8x128xf32, #tpu.memory_space<vmem>>, %arg3: memref<8x128xf32, #tpu.memory_space<vmem>>) attributes {dimension_semantics = [#tpu.dimension_semantics<parallel>], iteration_bounds = array<i64: 1>, scalar_prefetch = 0 : i64, scratch_operands = 0 : i64, tpu.core_type = #tpu.core_type<tc>, window_params = [{transform_indices = @transform_0, window_bounds = array<i64: 8, 128>}, {transform_indices = @transform_1, window_bounds = array<i64: 8, 128>}, {transform_indices = @transform_2, window_bounds = array<i64: 8, 128>}]} {
    %c0 = arith.constant 0 : index
    %c0_0 = arith.constant 0 : index
    %0 = vector.load %arg1[%c0, %c0_0] : memref<8x128xf32, #tpu.memory_space<vmem>>, vector<8x128xf32>
    %c0_1 = arith.constant 0 : index
    %c0_2 = arith.constant 0 : index
    %1 = vector.load %arg2[%c0_1, %c0_2] : memref<8x128xf32, #tpu.memory_space<vmem>>, vector<8x128xf32>
    %2 = arith.subf %0, %1 : vector<8x128xf32>
    %3 = arith.mulf %2, %2 : vector<8x128xf32>
    %4 = vector.shape_cast %3 : vector<8x128xf32> to vector<1x8x128xf32>
    %cst = arith.constant dense<0.000000e+00> : vector<8x128xf32>
    %5 = vector.multi_reduction <add>, %4, %cst [0] : vector<1x8x128xf32> to vector<8x128xf32>
    %c0_3 = arith.constant 0 : index
    %c0_4 = arith.constant 0 : index
    %6 = vector.load %arg3[%c0_3, %c0_4] : memref<8x128xf32, #tpu.memory_space<vmem>>, vector<8x128xf32>
    tpu.vector_store %arg3[%c0_3, %c0_4], %5 {strides = array<i32>} : memref<8x128xf32, #tpu.memory_space<vmem>>, vector<8x128xf32>,
    return
  }
  func.func @transform_0(%arg0: i32) -> (i32, i32) {
    %c0_i32 = arith.constant 0 : i32
    %c0_i32_0 = arith.constant 0 : i32
    return %arg0, %c0_i32 : i32, i32
  }
  func.func @transform_1(%arg0: i32) -> (i32, i32) {
    %c0_i32 = arith.constant 0 : i32
    %c0_i32_0 = arith.constant 0 : i32
    return %arg0, %c0_i32 : i32, i32
  }
  func.func @transform_2(%arg0: i32) -> (i32, i32) {
    %c0_i32 = arith.constant 0 : i32
    %c0_i32_0 = arith.constant 0 : i32
    return %arg0, %c0_i32 : i32, i32
  }
}

</mosaic_0001>

<bundles_post_ra>
// kernel: tpu_custom_call.1
= control target key start
LH: loop header
LB: loop body
LE: loop exit
PB: predicated region body
PF: predicated region fallthrough
CT: control target
= control target key end

     0   :  { %7 = vsyncpa [#allocation3], 0  ;;  %s154_s0 = inlined_call_operand.hbm [shape: f32[8,128], index: 0, kind: input, shape index: {}]   ;;  %s155_s1 = inlined_call_operand.hbm [shape: f32[8,128], index: 1, kind: input, shape index: {}]   ;;  %s156_s2 = inlined_call_operand.hbm [shape: f32[8,128], index: 2, kind: output, shape index: {}]  }
   0x1   :  { %8 = vsyncpa [#allocation6], 0 }
   0x2   :  { %9 = vsyncpa [#allocation4], 0  ;;  %s127_s9 = smov [#allocation2]   ;;  %s128_s11 = smov [#allocation5]  }
   0x3   :  { %s16_s10 = sshll.u32 %s127_s9, 4  ;;  %s26_s12 = sshll.u32 %s128_s11, 4  ;;  %s17_s10 = int_to_ptr.vmem [resolvable:$true] %s16_s10  ;;  %s27_s12 = int_to_ptr.vmem [resolvable:$true] %s26_s12 }
   0x4   :  { %s69_s13 = scalar_lea.vmem %s17_s10, 128  ;;  %p74_p1 = scmp.lt.s32.totalorder %s17_s10, %s17_s10 }
   0x5   :  { %p70_p0 = scmp.ne.s32.totalorder %s17_s10, %s69_s13  ;;  %p75_p2 = scmp.lt.s32.totalorder %s69_s13, %s69_s13 }
   0x7   :  { %p76_p3 = por %p75_p2, %p74_p1 }
   0x9   :  { %p77_p4 = pnand %p76_p3, %p70_p0 }
   0xb   :  { %80 = shalt.err (!%p77_p4)
}
   0xc   :  { %19 = dma.hbm_to_vmem [thread:$0]  %s154_s0, 128, %s17_s10, [#allocation3]  }
   0xd   :  { %s89_s16 = scalar_lea.vmem %s27_s12, 128  ;;  %p94_p6 = scmp.lt.s32.totalorder %s27_s12, %s27_s12 }
   0xe   :  { %p90_p5 = scmp.ne.s32.totalorder %s27_s12, %s89_s16  ;;  %p95_p7 = scmp.lt.s32.totalorder %s89_s16, %s89_s16 }
  0x10   :  { %p96_p8 = por %p95_p7, %p94_p6 }
  0x12   :  { %p97_p9 = pnand %p96_p8, %p90_p5 }
  0x14   :  { %100 = shalt.err (!%p97_p9)
}
  0x15   :  { %29 = dma.hbm_to_vmem [thread:$0]  %s155_s1, 128, %s27_s12, [#allocation6]  }
  0x16   :  { %121 = dma.done.wait [#allocation3], 128  }
  0x17   :  { %122 = vsyncadd [#allocation3], 4294967168 }
  0x18   :  { %123 = dma.done.wait [#allocation6], 128  }
  0x19   :  { %124 = vsyncadd [#allocation6], 4294967168  ;;  %v36_v0 = vld [vmem:[#allocation2] sm:$0xff]  ;;  %v37_v1 = vld [vmem:[#allocation5] sm:$0xff]  ;;  %s129_s19 = smov [#allocation7]  }
  0x1a   :  { %s48_s20 = sshll.u32 %s129_s19, 4  ;;  %v38_v2 = vsub.f32 %v36_v0, %v37_v1  ;;  %s49_s20 = int_to_ptr.vmem [resolvable:$true] %s48_s20 }
  0x1b   :  { %s101_s0 = scalar_lea.vmem %s49_s20, 128  ;;  %p106_p11 = scmp.lt.s32.totalorder %s49_s20, %s49_s20 }
  0x1c   :  { %v39_v3 = vmul.f32 %v38_v2, %v38_v2  ;;  %p102_p10 = scmp.ne.s32.totalorder %s49_s20, %s101_s0  ;;  %p107_p12 = scmp.lt.s32.totalorder %s101_s0, %s101_s0 }
  0x1e   :  { %41 = vst [vmem:[#allocation7] sm:$0xff] %v39_v3  ;;  %p108_p13 = por %p107_p12, %p106_p11 }
  0x20   :  { %p109_p0 = pnand %p108_p13, %p102_p10 }
  0x22   :  { %112 = shalt.err (!%p109_p0)
}
  0x23   :  { %51 = dma.vmem_to_hbm [thread:$0]  %s49_s20, 128, %s156_s2, [#allocation4]  }
  0x24   :  { %125 = dma.done.wait [#allocation4], 128  }
  0x25   :  { %126 = vsyncadd [#allocation4], 4294967168 }
  0x26   :  { %55 = vsyncpa [#allocation3], 1 }
  0x27   :  { %56 = vsyncpa [#allocation6], 1 }
  0x28   :  { %57 = vsyncpa [#allocation4], 1 }

</bundles_post_ra>
